<compile_context>
chip_gen: v6e
topology: v6e:2x2x1
jax: 0.10.0
libtpu: 0.0.40
codegen_flags: <defaults>
</compile_context>

<pallas_src>
import functools

import jax
import jax.numpy as jnp
from jax.experimental import pallas as pl
from jax.experimental.pallas import tpu as pltpu

EPS = 1e-5  # nn.LayerNorm default


def _round_up(v, m):
    return (v + m - 1) // m * m


def _conv_block_kernel(x_ref, keep_ref, w_ref, b_ref, g_ref, beta_ref, o_ref,
                       *, inv_cout):
    """One (batch, time-tile) block per grid step.

    x_ref:    (1, Tt, KCp)   bf16 im2col'd input tile
    keep_ref: (1, Tt, 1)     f32, 1.0 valid / 0.0 masked-or-padded
    w_ref:    (KCp, Coutp)   bf16 folded conv weights
    b_ref:    (1, Coutp)     f32 conv bias (zero-padded)
    g_ref:    (1, Coutp)     f32 LayerNorm gamma (zero-padded)
    beta_ref: (1, Coutp)     f32 LayerNorm beta (zero-padded)
    o_ref:    (1, Tt, Coutp) f32 output tile
    """
    # Conv1d == one deep matmul over the im2col'd (K*Cin) contraction dim (MXU).
    acc = jnp.dot(x_ref[0], w_ref[...],
                  preferred_element_type=jnp.float32)          # (Tt, Coutp) f32
    acc = acc + b_ref[0]                                       # padded ch stay 0

    # TransposeLayerNorm: LN over the real Cout channels, per time step.
    # Padded channels are exactly zero, so padded-axis sums == real-channel sums.
    s = jnp.sum(acc, axis=-1, keepdims=True)
    s2 = jnp.sum(acc * acc, axis=-1, keepdims=True)
    mean = s * inv_cout
    var = jnp.maximum(s2 * inv_cout - mean * mean, 0.0)        # one-pass stats
    y = (acc - mean) * jax.lax.rsqrt(var + EPS)
    y = y * g_ref[0] + beta_ref[0]

    # Single mask (the post-LN one is the only one that matters) + ReLU.
    y = jnp.maximum(y * keep_ref[0], 0.0)

    # Dropout: identity in eval mode.
    # TODO(synk): training-mode dropout (pltpu.prng_random_bits) not implemented.

    o_ref[0] = y.astype(o_ref.dtype)


def conv_block_1d(x_nct, x_mask, weight, bias, gamma, beta,
                  *, kernel_size=3, dilation=1, time_tile=512):
    """Forward pass of ConvBlock1D (eval mode).

    x_nct:   (N, Cin, T)  float32   -- PyTorch NCT layout
    x_mask:  (N, 1, T)    bool      -- True at positions to zero out
    weight:  (Cout, Cin, K) float32 -- PyTorch Conv1d weight layout
    bias, gamma, beta: (Cout,)
    returns: (N, Cout, T) float32
    """
    n, cin, t = x_nct.shape
    cout = weight.shape[0]
    k = kernel_size

    # ---- time tiling -------------------------------------------------------
    t_tile = min(time_tile, _round_up(t, 16))
    t_pad = _round_up(t, t_tile)
    n_t = t_pad // t_tile

    # ---- conv 'same' padding (PyTorch F.pad split: left = total // 2) ------
    total = dilation * (k - 1)
    pad_l = total // 2
    pad_r = total - pad_l

    # ---- channel padding to lane-dense multiples of 128 --------------------
    kc = k * cin
    kc_p = _round_up(kc, 128)
    cout_p = _round_up(cout, 128)

    # ---- build im2col activations: NCT -> NTC -> pad -> gather K taps ------
    x_ntc = jnp.transpose(x_nct, (0, 2, 1))                         # (N, T, Cin)
    x_padded = jnp.pad(
        x_ntc, ((0, 0), (pad_l, pad_r + (t_pad - t)), (0, 0)))      # (N, t_pad+total, Cin)
    cols = [
        jax.lax.slice_in_dim(x_padded, kd * dilation, kd * dilation + t_pad, axis=1)
        for kd in range(k)
    ]
    x_col = jnp.concatenate(cols, axis=-1)                          # (N, t_pad, K*Cin)
    x_col = jnp.pad(x_col, ((0, 0), (0, 0), (0, kc_p - kc)))
    x_col = x_col.astype(jnp.bfloat16)                              # bf16 MXU operand

    # ---- keep mask: 1.0 valid, 0.0 masked (and 0.0 on padded time rows) ----
    keep = jnp.where(x_mask, 0.0, 1.0).astype(jnp.float32)          # (N, 1, T)
    keep = jnp.transpose(keep, (0, 2, 1))                           # (N, T, 1)
    keep = jnp.pad(keep, ((0, 0), (0, t_pad - t), (0, 0)))          # (N, t_pad, 1)

    # ---- fold conv weights: (Cout, Cin, K) -> (K*Cin, Cout) -> pad -> bf16 --
    w = jnp.transpose(weight, (2, 1, 0)).reshape(kc, cout)          # tap-major rows
    w = jnp.pad(w, ((0, kc_p - kc), (0, cout_p - cout))).astype(jnp.bfloat16)
    b2 = jnp.pad(bias.astype(jnp.float32), (0, cout_p - cout)).reshape(1, cout_p)
    g2 = jnp.pad(gamma.astype(jnp.float32), (0, cout_p - cout)).reshape(1, cout_p)
    be2 = jnp.pad(beta.astype(jnp.float32), (0, cout_p - cout)).reshape(1, cout_p)

    kernel = functools.partial(_conv_block_kernel, inv_cout=1.0 / cout)

    out_ntc = pl.pallas_call(
        kernel,
        out_shape=jax.ShapeDtypeStruct((n, t_pad, cout_p), jnp.float32),
        grid_spec=pltpu.PrefetchScalarGridSpec(
            num_scalar_prefetch=0,
            grid=(n, n_t),
            in_specs=[
                pl.BlockSpec((1, t_tile, kc_p), lambda b, j: (b, j, 0)),
                pl.BlockSpec((1, t_tile, 1), lambda b, j: (b, j, 0)),
                pl.BlockSpec((kc_p, cout_p), lambda b, j: (0, 0)),
                pl.BlockSpec((1, cout_p), lambda b, j: (0, 0)),
                pl.BlockSpec((1, cout_p), lambda b, j: (0, 0)),
                pl.BlockSpec((1, cout_p), lambda b, j: (0, 0)),
            ],
            out_specs=pl.BlockSpec((1, t_tile, cout_p), lambda b, j: (b, j, 0)),
        ),
        compiler_params=pltpu.CompilerParams(
            dimension_semantics=("parallel", "parallel"),
            vmem_limit_bytes=48 * 1024 * 1024,
        ),
    )(x_col, keep, w, b2, g2, be2)

    # Slice off channel/time padding, back to PyTorch NCT layout.
    return jnp.transpose(out_ntc[:, :t, :cout], (0, 2, 1))          # (N, Cout, T)


# ---------------------------- pure-JAX reference ----------------------------
def _ref_conv_block(x, x_mask, weight, bias, gamma, beta, kernel_size, dilation):
    total = dilation * (kernel_size - 1)
    pad_left = total // 2
    pad_right = total - pad_left
    xp = jnp.pad(x, ((0, 0), (0, 0), (pad_left, pad_right)))
    out = jax.lax.conv_general_dilated(
        xp, weight, window_strides=(1,), padding="VALID",
        rhs_dilation=(dilation,), dimension_numbers=("NCH", "OIH", "NCH"))
    out = out + bias[None, :, None]
    out = jnp.where(x_mask, 0.0, out)
    mean = out.mean(axis=1, keepdims=True)
    var = ((out - mean) ** 2).mean(axis=1, keepdims=True)
    out = (out - mean) / jnp.sqrt(var + EPS) * gamma[None, :, None] + beta[None, :, None]
    out = jnp.where(x_mask, 0.0, out)
    out = jnp.maximum(out, 0.0)
    out = jnp.where(x_mask, 0.0, out)
    return out


if __name__ == "__main__":
    key = jax.random.PRNGKey(0)
    N, CIN, COUT, T, K, DIL = 2, 4, 8, 16, 3, 1

    k_x, k_w, k_b, k_g, k_be = jax.random.split(key, 5)
    x = jax.random.normal(k_x, (N, CIN, T), dtype=jnp.float32)

    # mask out the tail of each sequence (True = masked / padded position)
    lengths = jnp.array([16, 11], dtype=jnp.int32)
    pos = jnp.arange(T)[None, None, :]                              # (1, 1, T)
    x_mask = pos >= lengths[:, None, None]                          # (N, 1, T) bool

    # Deterministic synthetic parameters (PyTorch-like shapes).
    w_scale = 1.0 / jnp.sqrt(CIN * K)
    weight = jax.random.uniform(k_w, (COUT, CIN, K), jnp.float32,
                                minval=-w_scale, maxval=w_scale)
    bias = jax.random.uniform(k_b, (COUT,), jnp.float32,
                              minval=-w_scale, maxval=w_scale)
    gamma = jnp.ones((COUT,), jnp.float32)
    beta = jnp.zeros((COUT,), jnp.float32)

    out = conv_block_1d(x, x_mask, weight, bias, gamma, beta,
                        kernel_size=K, dilation=DIL)
    jax.block_until_ready(out)
    assert out.shape == (N, COUT, T)

    # Correctness check against a pure-JAX f32 reference (loose tol: bf16 matmul).
    ref = _ref_conv_block(x, x_mask, weight, bias, gamma, beta, K, DIL)
    assert jnp.allclose(out, ref, atol=5e-2, rtol=5e-2), \
        f"max abs err {jnp.max(jnp.abs(out - ref))}"

    print("KERNEL_OK")
</pallas_src>

<mosaic_0001>
module attributes {stable_mosaic.version = 11 : i64} {
  func.func @_conv_block_kernel(%arg0: i32, %arg1: i32, %arg2: memref<1x16x128xbf16, #tpu.memory_space<vmem>>, %arg3: memref<1x16x1xf32, #tpu.memory_space<vmem>>, %arg4: memref<128x128xbf16, #tpu.memory_space<vmem>>, %arg5: memref<1x128xf32, #tpu.memory_space<vmem>>, %arg6: memref<1x128xf32, #tpu.memory_space<vmem>>, %arg7: memref<1x128xf32, #tpu.memory_space<vmem>>, %arg8: memref<1x16x128xf32, #tpu.memory_space<vmem>>) attributes {dimension_semantics = [#tpu.dimension_semantics<parallel>, #tpu.dimension_semantics<parallel>], iteration_bounds = array<i64: 2, 1>, scalar_prefetch = 0 : i64, scratch_operands = 0 : i64, tpu.core_type = #tpu.core_type<tc>, window_params = [{transform_indices = @transform_0, window_bounds = array<i64: 1, 16, 128>}, {transform_indices = @transform_1, window_bounds = array<i64: 1, 16, 1>}, {pipeline_mode = #tpu.pipeline_mode<synchronous>, transform_indices = @transform_2, window_bounds = array<i64: 128, 128>}, {pipeline_mode = #tpu.pipeline_mode<synchronous>, transform_indices = @transform_3, window_bounds = array<i64: 1, 128>}, {pipeline_mode = #tpu.pipeline_mode<synchronous>, transform_indices = @transform_4, window_bounds = array<i64: 1, 128>}, {pipeline_mode = #tpu.pipeline_mode<synchronous>, transform_indices = @transform_5, window_bounds = array<i64: 1, 128>}, {transform_indices = @transform_6, window_bounds = array<i64: 1, 16, 128>}]} {
    %c0 = arith.constant 0 : index
    %c0_0 = arith.constant 0 : index
    %c0_1 = arith.constant 0 : index
    %0 = vector.load %arg2[%c0, %c0_0, %c0_1] : memref<1x16x128xbf16, #tpu.memory_space<vmem>>, vector<1x16x128xbf16>
    %1 = vector.shape_cast %0 : vector<1x16x128xbf16> to vector<16x128xbf16>
    %c0_2 = arith.constant 0 : index
    %c0_3 = arith.constant 0 : index
    %2 = vector.load %arg4[%c0_2, %c0_3] : memref<128x128xbf16, #tpu.memory_space<vmem>>, vector<128x128xbf16>
    %cst = arith.constant dense<0.000000e+00> : vector<16x128xf32>
    %3 = tpu.matmul %1, %2, %cst {dimension_numbers = #tpu.dot_dimension_numbers<[1], [0], [0], [1], [0, 0, 1, 1], [], []>} : vector<16x128xbf16>, vector<128x128xbf16>, vector<16x128xf32> -> vector<16x128xf32>
    %c0_4 = arith.constant 0 : index
    %c0_5 = arith.constant 0 : index
    %4 = vector.load %arg5[%c0_4, %c0_5] : memref<1x128xf32, #tpu.memory_space<vmem>>, vector<1x128xf32>
    %5 = vector.shape_cast %4 : vector<1x128xf32> to vector<128xf32>
    %6 = vector.shape_cast %5 : vector<128xf32> to vector<1x128xf32>
    %7 = vector.broadcast %6 : vector<1x128xf32> to vector<16x128xf32>
    %8 = arith.addf %3, %7 : vector<16x128xf32>
    %cst_6 = arith.constant dense<0.000000e+00> : vector<16xf32>
    %9 = vector.multi_reduction <add>, %8, %cst_6 [1] : vector<16x128xf32> to vector<16xf32>
    %10 = vector.shape_cast %9 : vector<16xf32> to vector<16x1xf32>
    %11 = arith.mulf %8, %8 : vector<16x128xf32>
    %cst_7 = arith.constant dense<0.000000e+00> : vector<16xf32>
    %12 = vector.multi_reduction <add>, %11, %cst_7 [1] : vector<16x128xf32> to vector<16xf32>
    %13 = vector.shape_cast %12 : vector<16xf32> to vector<16x1xf32>
    %cst_8 = arith.constant 1.250000e-01 : f32
    %14 = vector.broadcast %cst_8 : f32 to vector<16x1xf32>
    %15 = arith.mulf %10, %14 : vector<16x1xf32>
    %cst_9 = arith.constant 1.250000e-01 : f32
    %16 = vector.broadcast %cst_9 : f32 to vector<16x1xf32>
    %17 = arith.mulf %13, %16 : vector<16x1xf32>
    %18 = arith.mulf %15, %15 : vector<16x1xf32>
    %19 = arith.subf %17, %18 : vector<16x1xf32>
    %cst_10 = arith.constant 0.000000e+00 : f32
    %20 = vector.broadcast %cst_10 : f32 to vector<16x1xf32>
    %21 = arith.maximumf %19, %20 : vector<16x1xf32>
    %22 = vector.broadcast %15 : vector<16x1xf32> to vector<16x128xf32>
    %23 = arith.subf %8, %22 : vector<16x128xf32>
    %cst_11 = arith.constant 9.99999974E-6 : f32
    %24 = vector.broadcast %cst_11 : f32 to vector<16x1xf32>
    %25 = arith.addf %21, %24 : vector<16x1xf32>
    %26 = math.rsqrt %25 : vector<16x1xf32>
    %27 = vector.broadcast %26 : vector<16x1xf32> to vector<16x128xf32>
    %28 = arith.mulf %23, %27 : vector<16x128xf32>
    %c0_12 = arith.constant 0 : index
    %c0_13 = arith.constant 0 : index
    %29 = vector.load %arg6[%c0_12, %c0_13] : memref<1x128xf32, #tpu.memory_space<vmem>>, vector<1x128xf32>
    %30 = vector.shape_cast %29 : vector<1x128xf32> to vector<128xf32>
    %31 = vector.shape_cast %30 : vector<128xf32> to vector<1x128xf32>
    %32 = vector.broadcast %31 : vector<1x128xf32> to vector<16x128xf32>
    %33 = arith.mulf %28, %32 : vector<16x128xf32>
    %c0_14 = arith.constant 0 : index
    %c0_15 = arith.constant 0 : index
    %34 = vector.load %arg7[%c0_14, %c0_15] : memref<1x128xf32, #tpu.memory_space<vmem>>, vector<1x128xf32>
    %35 = vector.shape_cast %34 : vector<1x128xf32> to vector<128xf32>
    %36 = vector.shape_cast %35 : vector<128xf32> to vector<1x128xf32>
    %37 = vector.broadcast %36 : vector<1x128xf32> to vector<16x128xf32>
    %38 = arith.addf %33, %37 : vector<16x128xf32>
    %c0_16 = arith.constant 0 : index
    %c0_17 = arith.constant 0 : index
    %c0_18 = arith.constant 0 : index
    %39 = vector.load %arg3[%c0_16, %c0_17, %c0_18] : memref<1x16x1xf32, #tpu.memory_space<vmem>>, vector<1x16x1xf32>
    %40 = vector.shape_cast %39 : vector<1x16x1xf32> to vector<16x1xf32>
    %41 = vector.broadcast %40 : vector<16x1xf32> to vector<16x128xf32>
    %42 = arith.mulf %38, %41 : vector<16x128xf32>
    %cst_19 = arith.constant 0.000000e+00 : f32
    %43 = vector.broadcast %cst_19 : f32 to vector<16x128xf32>
    %44 = arith.maximumf %42, %43 : vector<16x128xf32>
    %c0_20 = arith.constant 0 : index
    %c0_21 = arith.constant 0 : index
    %c0_22 = arith.constant 0 : index
    %45 = vector.load %arg8[%c0_20, %c0_21, %c0_22] : memref<1x16x128xf32, #tpu.memory_space<vmem>>, vector<1x16x128xf32>
    %46 = vector.shape_cast %45 : vector<1x16x128xf32> to vector<16x128xf32>
    %47 = vector.shape_cast %44 : vector<16x128xf32> to vector<1x16x128xf32>
    tpu.vector_store %arg8[%c0_20, %c0_21, %c0_22], %47 {strides = array<i32>} : memref<1x16x128xf32, #tpu.memory_space<vmem>>, vector<1x16x128xf32>,
    return
  }
  func.func @transform_0(%arg0: i32, %arg1: i32) -> (i32, i32, i32) {
    %c0_i32 = arith.constant 0 : i32
    %c0_i32_0 = arith.constant 0 : i32
    return %arg0, %arg1, %c0_i32 : i32, i32, i32
  }
  func.func @transform_1(%arg0: i32, %arg1: i32) -> (i32, i32, i32) {
    %c0_i32 = arith.constant 0 : i32
    %c0_i32_0 = arith.constant 0 : i32
    return %arg0, %arg1, %c0_i32 : i32, i32, i32
  }
  func.func @transform_2(%arg0: i32, %arg1: i32) -> (i32, i32) {
    %c0_i32 = arith.constant 0 : i32
    %c0_i32_0 = arith.constant 0 : i32
    %c0_i32_1 = arith.constant 0 : i32
    return %c0_i32, %c0_i32_0 : i32, i32
  }
  func.func @transform_3(%arg0: i32, %arg1: i32) -> (i32, i32) {
    %c0_i32 = arith.constant 0 : i32
    %c0_i32_0 = arith.constant 0 : i32
    %c0_i32_1 = arith.constant 0 : i32
    return %c0_i32, %c0_i32_0 : i32, i32
  }
  func.func @transform_4(%arg0: i32, %arg1: i32) -> (i32, i32) {
    %c0_i32 = arith.constant 0 : i32
    %c0_i32_0 = arith.constant 0 : i32
    %c0_i32_1 = arith.constant 0 : i32
    return %c0_i32, %c0_i32_0 : i32, i32
  }
  func.func @transform_5(%arg0: i32, %arg1: i32) -> (i32, i32) {
    %c0_i32 = arith.constant 0 : i32
    %c0_i32_0 = arith.constant 0 : i32
    %c0_i32_1 = arith.constant 0 : i32
    return %c0_i32, %c0_i32_0 : i32, i32
  }
  func.func @transform_6(%arg0: i32, %arg1: i32) -> (i32, i32, i32) {
    %c0_i32 = arith.constant 0 : i32
    %c0_i32_0 = arith.constant 0 : i32
    return %arg0, %arg1, %c0_i32 : i32, i32, i32
  }
}

</mosaic_0001>

<bundles_post_ra>
// kernel: tpu_custom_call.1
= control target key start
LH: loop header
LB: loop body
LE: loop exit
PB: predicated region body
PF: predicated region fallthrough
CT: control target
= control target key end

     0   :  { %11 = vsyncpa [#allocation3], 0  ;;  %s1094_s0 = inlined_call_operand.vmem [shape: bf16[2,16,128], index: 0, kind: input, shape index: {}]   ;;  %s1095_s1 = inlined_call_operand.vmem [shape: f32[2,16,1], index: 1, kind: input, shape index: {}]   ;;  %s1096_s2 = inlined_call_operand.hbm [shape: bf16[128,128], index: 2, kind: input, shape index: {}]   ;;  %s1097_s3 = inlined_call_operand.vmem [shape: f32[1,128], index: 3, kind: input, shape index: {}]   ;;  %s1098_s4 = inlined_call_operand.vmem [shape: f32[1,128], index: 4, kind: input, shape index: {}]   ;;  %s1099_s5 = inlined_call_operand.vmem [shape: f32[1,128], index: 5, kind: input, shape index: {}]   ;;  %s1100_s6 = inlined_call_operand.hbm [shape: f32[2,16,128], index: 6, kind: output, shape index: {}]  }
   0x1   :  { %12 = vsyncpa [#allocation4], 0 }
   0x2   :  { %14 = vsyncpa [#allocation4 + $0x1], 0  ;;  %s943_s21 = smov 0   ;;  %s945_s22 = smov 0  }
   0x3   :  { %s947_s23 = smov 0   ;;  %s949_s24 = smov 0  }
   0x4   :  { %s951_s25 = smov 0   ;;  %s953_s26 = smov 0  }
   0x5 LB: > { %s642_s27 = sadd.s32 4294967295, %s897_s26   ;;  %s643_s28 = sadd.s32 4294967294, %s897_s26   ;;  %s897_s26 = sphi %s953_s26, %s20_s26   ;;  %s893_s25 = sphi %s951_s25, %s1109_s25   ;;  %s889_s24 = sphi %s949_s24, %s1108_s24   ;;  %s885_s23 = sphi %s947_s23, %s1107_s23   ;;  %s881_s22 = sphi %s945_s22, %s1106_s22   ;;  %s877_s21 = sphi %s943_s21, %s1105_s21  }
   0x6   : > { %s32_s29 = sadd.s32 1, %s893_s25  ;;  %s181_s30 = sadd.s32 1, %s885_s23 }
   0x7   : > { %p34_p0 = scmp.ge.s32.totalorder %s32_s29, 2  ;;  %p191_p1 = scmp.ne.s32.totalorder %s885_s23, %s881_s22 }
   0x8   : > { %p192_p2 = scmp.eq.s32.totalorder %s642_s27, 1  ;;  %p197_p3 = scmp.ne.s32.totalorder %s881_s22, %s877_s21 }
   0x9   : > { %s1111_s29 = smov (%p34_p0, %s32_s29), 0  ;;  %p198_p5 = scmp.eq.s32.totalorder %s643_s28, 1 }
   0xa   : > { %p983_p4 = por %p192_p2, %p191_p1  ;;  %s176_s8 = ssub.s32 %s893_s25, %s1111_s29 }
   0xb   : > { %p644_p6 = scmp.ge.s32.totalorder %s897_s26, 1  ;;  %p179_p7 = scmp.eq.s32.totalorder %s176_s8, 0 }
   0xc   : > { %p990_p8 = por %p198_p5, %p197_p3  ;;  %p205_p9 = scmp.lt.s32.totalorder %s897_s26, 3 }
   0xd   : > { %s996_s10 = scalar_select %p179_p7, %s885_s23, %s181_s30  }
   0xe   : > { %p998_p10 = pnand %p644_p6, %p205_p9  ;;  %p1002_p11 = scmp.eq.s32.totalorder %s642_s27, 0 }
   0xf   : > { %s899_s13 = smov [#allocation2]  }
  0x10   : > { %p709_p12 = pneg %p998_p10  ;;  %s217_s14 = sshll.u32 %s899_s13, 4  ;;  %s218_s14 = int_to_ptr.vmem [resolvable:$true] %s217_s14 }
  0x11   : > { %s802_s15 = scalar_lea.vmem %s218_s14, 1024  ;;  %p810_p5 = scmp.lt.s32.totalorder %s218_s14, %s218_s14 }
  0x12   : > { %p710_p13 = pnand %p1002_p11, %p709_p12  ;;  %p803_p1 = scmp.ne.s32.totalorder %s218_s14, %s802_s15 }
  0x13   : > { %p811_p6 = scmp.lt.s32.totalorder %s802_s15, %s802_s15 }
  0x14   : > { %p793_p0 = pneg %p710_p13 }
  0x15   : > { %p812_p7 = por %p811_p6, %p810_p5 }
  0x16   : > { %p805_p2 = pnand %p803_p1, %p793_p0 }
  0x18   : > { %p806_p3 = pneg %p805_p2 }
  0x1a   : > { %p813_p9 = pnand %p812_p7, %p806_p3 }
  0x1c   : > { %816 = shalt.err (!%p813_p9)
}
  0x1d   : > { %s900_s16 = smov 64   ;;  %s901_s17 = smov 4  }
  0x1e   : > { %712 = dma.hbm_to_vmem [thread:$0]  (!%p710_p13), %s1096_s2, 1024, %s218_s14, [#allocation3], %s900_s16, %s900_s16, %s901_s17  }
  0x1f   : > { %268 = sbr.rel (%p998_p10) target bundleno = 455 (0x1c7), region = 44 }
  0x24   : > { %868 = dma.done.wait (%p1002_p11), [#allocation3], 1024  }
  0x25   : > { %870 = vsyncadd (%p1002_p11), [#allocation3], 4294966272  ;;  %v902_v0 = vmov 0.0   ;;  %vm903_vm0 = vmmov 0   ;;  %p312_p12 = scmp.lt.s32.totalorder %s889_s24, 1  ;;  %v778_v1 = vld [vmem:[#allocation2 + $0x38] sm:$0xff]  }
  0x26   : > { %683 = vmatprep.subr.bf16.mxu0 %v902_v0  ;;  %699 = vmatprep.mubr.msk.bf16.mxu0 %vm903_vm0, %v902_v0  ;;  %v779_v2 = vld [vmem:[#allocation2 + $0x30] sm:$0xff]   ;;  %v780_v3 = vld [vmem:[#allocation2 + $0x28] sm:$0xff]   ;;  %v781_v4 = vld [vmem:[#allocation2 + $0x20] sm:$0xff]   ;;  %v904_v10 = vmov 0   ;;  %s308_s19 = sand.u32 1, %s881_s22   ;;  %s673_s11 = sshll.u32 %s889_s24, 8 }
  0x27   : > { %s1021_s20 = scalar_select %p312_p12, %s889_s24, 1  ;;  %684 = vmatpush3.bf16.msra.mxu0 %v778_v1  ;;  %v782_v5 = vld [vmem:[#allocation2 + $0x18] sm:$0xff]   ;;  %v783_v6 = vld [vmem:[#allocation2 + $0x10] sm:$0xff]   ;;  %v784_v7 = vld [vmem:[#allocation2 + $0x8] sm:$0xff]   ;;  %776 = vset.pattern.permute.xlu0 %v904_v10 }
  0x28   : > { %685 = vmatprep.subr.bf16.mxu0 %v902_v0  ;;  %v785_v8 = vld [vmem:[#allocation2] sm:$0xff]   ;;  %777 = vset.pattern.permute.xlu1 %v904_v10  ;;  %s649_s28 = sshll.u32 %s308_s19, 4  ;;  %s1047_s14 = scalar_lea.hbm %s1100_s6, %s673_s11 }
  0x29   : > { %s671_s27 = sshll.u32 %s1021_s20, 3  ;;  %v654_v11 = vld [vmem:[%s1097_s3] ss:$0 sm:$0xff]  ;;  %s672_s13 = sshll.u32 %s1021_s20, 4 }
  0x2a   : > { %s319_s8 = scalar_lea.vmem %s1094_s0, %s671_s27  ;;  %s329_s16 = scalar_lea.vmem %s1095_s1, %s672_s13  ;;  %v664_v40 = vld [vmem:[%s1098_s4] ss:$0 sm:$0xff] }
  0x2b   : > { %686 = vmatpush3.bf16.msra.mxu0 %v779_v2  ;;  %v786_v9 = vld [vmem:[%s319_s8] sm:$0xff]   ;;  %v500_v20 = vld [vmem:[%s329_s16 + $0x8] sm:$0xff]  ;;  %s310_s30 = scalar_lea.vmem [#allocation5], %s649_s28  ;;  %s1049_s15 = scalar_lea.sflag [#allocation4], %s308_s19 }
  0x2c   : > { %687 = vmatprep.subr.bf16.mxu0 %v902_v0  ;;  %v499_v21 = vld [vmem:[%s329_s16] sm:$0xff]  ;;  %s533_s8 = sshll.u32 %s310_s30, 4  ;;  %s905_s24 = smov [#allocation5]   ;;  %s1042_s8 = int_to_ptr.vmem [resolvable:$true] %s533_s8 }
  0x2d   : > { %v665_v42 = vld [vmem:[%s1099_s5] ss:$0 sm:$0xff]  ;;  %s817_s16 = scalar_lea.vmem %s1042_s8, 256  ;;  %s821_s17 = sshll.u32 %s905_s24, 4  ;;  %s822_s17 = int_to_ptr.vmem [resolvable:$false] %s821_s17 }
  0x2e   : > { %p818_p10 = scmp.ne.s32.totalorder %s1042_s8, %s817_s16  ;;  %s823_s18 = scalar_lea.vmem %s822_s17, 512 }
  0x2f   : > { %688 = vmatpush3.bf16.msra.mxu0 %v780_v3  ;;  %p824_p0 = scmp.lt.s32.totalorder %s1042_s8, %s822_s17  ;;  %p825_p1 = scmp.lt.s32.totalorder %s823_s18, %s817_s16 }
  0x30   : > { %689 = vmatprep.subr.bf16.mxu0 %v902_v0  ;;  %p819_p11 = pnand %p818_p10, %p983_p4 }
  0x31   : > { %p826_p2 = por %p825_p1, %p824_p0 }
  0x32   : > { %p820_p13 = pneg %p819_p11 }
  0x33   : > { %690 = vmatpush3.bf16.msra.mxu0 %v781_v4 }
  0x34   : > { %691 = vmatprep.subr.bf16.mxu0 %v902_v0  ;;  %p827_p3 = pnand %p826_p2, %p820_p13 }
  0x37   : > { %692 = vmatpush3.bf16.msra.mxu0 %v782_v5 }
  0x38   : > { %693 = vmatprep.subr.bf16.mxu0 %v902_v0 }
  0x3b   : > { %694 = vmatpush3.bf16.msra.mxu0 %v783_v6 }
  0x3c   : > { %695 = vmatprep.subr.bf16.mxu0 %v902_v0 }
  0x3f   : > { %696 = vmatpush3.bf16.msra.mxu0 %v784_v7 }
  0x40   : > { %697 = vmatprep.subr.bf16.mxu0 %v902_v0 }
  0x43   : > { %698 = vmatpush3.bf16.msra.mxu0 %v785_v8 }
  0x46   : > { %700 = vmatmul.mubr.bf16.vlgmr.msra.gmra.mxu0 %v786_v9 }
 0x106   : > { %v446_v12 = vpop.f32.mrf.mxu0 }
 0x107   : > { %v447_v13 = vadd.f32 %v654_v11, %v446_v12 }
 0x108   : > { %v701_v14 = vpop.f32.mrf.mxu0 }
 0x109   : > { %453 = vadd.xlane.f32.xlu0 %v447_v13  ;;  %v457_v15 = vmul.f32 %v447_v13, %v447_v13 }
 0x10a   : > { %v449_v16 = vpop.f32.mrf.mxu0 }
 0x10b   : > { %v450_v17 = vadd.f32 %v654_v11, %v449_v16  ;;  %459 = vadd.xlane.f32.xlu1 %v457_v15 }
 0x10c   : > { %v702_v18 = vpop.f32.mrf.mxu0 }
 0x10d   : > { %455 = vadd.xlane.f32.xlu0 %v450_v17  ;;  %v458_v19 = vmul.f32 %v450_v17, %v450_v17 }
 0x10f   : > { %461 = vadd.xlane.f32.xlu1 %v458_v19 }
 0x120   : > { %508 = vperm.xlu1 %777, %v500_v20  }
 0x123   : > { %503 = vperm.xlu0 %776, %v499_v21  }
 0x192   : > { %v454_v22 = vpop.xlane.xlu0 %453 }
 0x193   : > { %v463_v23 = vmul.f32 0.125, %v454_v22 }
 0x194   : > { %v460_v24 = vpop.xlane.xlu1 %459 }
 0x195   : > { %v467_v25 = vmul.f32 %v463_v23, %v463_v23  ;;  %v465_v26 = vmul.f32 0.125, %v460_v24  ;;  %v473_v38 = vsub.f32 %v447_v13, %v463_v23 }
 0x196   : > { %v456_v27 = vpop.xlane.xlu0 %455 }
 0x197   : > { %v469_v28 = vsub.f32 %v465_v26, %v467_v25  ;;  %v464_v29 = vmul.f32 0.125, %v456_v27 }
 0x198   : > { %v462_v30 = vpop.xlane.xlu1 %461 }
 0x199   : > { %v471_v31 = vmax.f32 %v469_v28, 0.0  ;;  %v468_v32 = vmul.f32 %v464_v29, %v464_v29  ;;  %v466_v33 = vmul.f32 0.125, %v462_v30  ;;  %v474_v43 = vsub.f32 %v450_v17, %v464_v29 }
 0x19b   : > { %v475_v34 = vadd.f32 1e-05, %v471_v31  ;;  %v470_v35 = vsub.f32 %v466_v33, %v468_v32 }
 0x19c   : > { %v509_v51 = vpop.permute.xlu1 %508 }
 0x19d   : > { %787 = vrsqrt.f32 %v475_v34  ;;  %v472_v36 = vmax.f32 %v470_v35, 0.0 }
 0x19e   : > { %v504_v46 = vpop.permute.xlu0 %503 }
 0x19f   : > { %v476_v37 = vadd.f32 1e-05, %v472_v36 }
 0x1a1   : > { %789 = vrsqrt.f32 %v476_v37 }
 0x1aa   : > { %v788_v39 = vpop.eup %787 }
 0x1ab   : > { %v479_v41 = vmul.f32 %v788_v39, %v473_v38 }
 0x1ad   : > { %v488_v44 = vmul.f32 %v664_v40, %v479_v41 }
 0x1ae   : > { %v790_v45 = vpop.eup %789 }
 0x1af   : > { %v497_v47 = vadd.f32 %v665_v42, %v488_v44  ;;  %v480_v48 = vmul.f32 %v790_v45, %v474_v43 }
 0x1b1   : > { %v511_v49 = vmul.f32 %v504_v46, %v497_v47  ;;  %v489_v50 = vmul.f32 %v664_v40, %v480_v48 }
 0x1b3   : > { %v513_v52 = vmax.f32 %v511_v49, 0.0  ;;  %v498_v53 = vadd.f32 %v665_v42, %v489_v50 }
 0x1b5   : > { %515 = vst [vmem:[%s310_s30] sm:$0xff] %v513_v52  ;;  %v512_v54 = vmul.f32 %v509_v51, %v498_v53 }
 0x1b7   : > { %v514_v55 = vmax.f32 %v512_v54, 0.0 }
 0x1b9   : > { %516 = vst [vmem:[%s310_s30 + $0x8] sm:$0xff] %v514_v55 }
 0x1ba   : > { %830 = shalt.err (!%p827_p3)
}
 0x1bb   : > { %s831_s19 = scalar_lea.hbm %s1047_s14, 256  ;;  %s835_s28 = scalar_lea.hbm %s1100_s6, 512 }
 0x1bc   : > { %p832_p5 = scmp.ne.s32.totalorder %s1047_s14, %s831_s19  ;;  %p836_p9 = scmp.lt.s32.totalorder %s1047_s14, %s1100_s6 }
 0x1bd   : > { %p837_p12 = scmp.lt.s32.totalorder %s835_s28, %s831_s19 }
 0x1be   : > { %p833_p6 = pnand %p832_p5, %p983_p4 }
 0x1bf   : > { %p838_p10 = por %p837_p12, %p836_p9 }
 0x1c0   : > { %p834_p7 = pneg %p833_p6 }
 0x1c2   : > { %p839_p11 = pnand %p838_p10, %p834_p7 }
 0x1c4   : > { %842 = shalt.err (!%p839_p11)
}
 0x1c5   : > { %s906_s12 = smov 128   ;;  %s907_s13 = smov 8  }
 0x1c6   : > { %707 = dma.vmem_to_hbm [thread:$0]  (%p983_p4), %s1042_s8, 256, %s1047_s14, %s1049_s15, %s906_s12, %s906_s12, %s907_s13  }
 0x1c7 PF: > { %p719_p13 = scmp.ge.s32.totalorder %s897_s26, 2  ;;  %s548_s16 = sand.u32 1, %s877_s21  }
 0x1c8   : > { %s549_s24 = scalar_lea.sflag [#allocation4], %s548_s16 }
 0x1c9   : > { %p714_p0 = pnand %p719_p13, %p990_p8 }
 0x1cb   : > { %p715_p1 = pneg %p714_p0 }
 0x1cd   : > { %872 = dma.done.wait (%p715_p1), %s549_s24, 256  }
 0x1ce   : > { %874 = vsyncadd (%p715_p1), %s549_s24, 4294967040  ;;  %s20_s26 = sadd.s32 1, %s897_s26   ;;  %s1105_s21 = smov %s881_s22 }
 0x1cf   : > { %p17_p2 = scmp.ge.s32.totalorder %s20_s26, 4   ;;  %s1106_s22 = smov %s885_s23 }
 0x1d0   : > { %s1107_s23 = smov %s996_s10  ;;  %s1108_s24 = smov %s893_s25 }
 0x1d1   : > { %s1109_s25 = smov %s1111_s29  ;;  %19 = sbr.rel (!%p17_p2) target bundleno = 5 (0x5), region = 87 }
 0x1d6   :  { %554 = vsyncpa [#allocation3], 1 }
 0x1d7   :  { %556 = vsyncpa [#allocation3 + $0x1], 1 }
 0x1d8   :  { %557 = vsyncpa [#allocation4], 1 }
 0x1d9   :  { %559 = vsyncpa [#allocation4 + $0x1], 1 }

</bundles_post_ra>
